<compile_context>
chip_gen: v5e
topology: v5e:2x2
jax: 0.10.0
libtpu: 0.0.40
codegen_flags: <defaults>
</compile_context>

<pallas_src>
import functools
import math

import jax
import jax.numpy as jnp
import numpy as np
from jax import lax
from jax.experimental import pallas as pl
from jax.experimental.pallas import tpu as pltpu


_VMEM_LIMIT = 48 * 1024 * 1024        # < 64 MiB physical VMEM on v7x
_FMU_VMEM_BUDGET = 24 * 1024 * 1024   # budget used to size the pool/FMU block


def _ceil_to(n, m):
    return ((n + m - 1) // m) * m


# ---------------------------------------------------------------------------
# Pallas kernels
# ---------------------------------------------------------------------------

def _fmu_pad_kernel(*refs, n_in, pad0, p_total, fmu):
    """Fuse (already max-pooled) streams with FMU, cast to the output dtype and
    emit a flat activation with zero-padded, lane-aligned borders:

        out[:, pad0:pad0+P] = FMU(a, b);   out[:, :pad0] = out[:, pad0+P:] = 0

    Borders and interior are each written exactly once (pad0 is a multiple of
    128, so the border stores are lane-aligned)."""
    o_ref = refs[n_in]
    res = refs[0][...]
    if n_in == 2:
        b = refs[1][...]
        if fmu == 'sub':
            res = jnp.abs(res - b)
        elif fmu == 'sum':
            res = res + b
        else:
            raise NotImplementedError(fmu)
    z = jnp.zeros((o_ref.shape[0], pad0), o_ref.dtype)
    o_ref[:, pl.ds(0, pad0)] = z
    o_ref[:, pl.ds(pad0 + p_total, pad0)] = z
    o_ref[:, pl.ds(pad0, p_total)] = res.astype(o_ref.dtype)


def _conv_in_lrelu_kernel(x_ref, w_ref, m_ref, gb_ref, o_ref, patch_ref, *,
                          groups, cin, k_total, k_pad, p_total, pad0,
                          out_padded, eps, slope):
    """One CNA3d layer for one batch sample (implicit GEMM):

        Conv3d(stride 1, 'same') + InstanceNorm3d(affine) + LeakyReLU.

    x_ref    : (1, Cin, pad0 + P + pad0) flat, zero-bordered activation (bf16).
    w_ref    : (Cout, K_pad) bf16 weights, tap-major (k = tap*Cin + ci), K
               zero-padded to a multiple of 128.  Conv bias is omitted: it is
               exactly cancelled by InstanceNorm's mean subtraction.
    m_ref    : (kh*kw, 1, P) f32 0/1 masks zeroing H/W halo taps (shared by all
               depth taps); the D halo is covered by the flat zero borders.
    gb_ref   : (Cout, 2) f32, column 0 = gamma, column 1 = beta.
    o_ref    : (1, Cout, P) or, if out_padded, (1, Cout, pad0+P+pad0) with
               zeroed borders (directly consumable by the next conv layer).
    patch_ref: (K_pad, P) bf16 VMEM scratch holding the im2col tile.
    """
    cout = w_ref.shape[0]

    # Zero the K-padding rows only once: the grid axis is 'arbitrary'
    # (sequential), so step 0 runs first and the scratch persists afterwards.
    if k_pad > k_total:
        @pl.when(pl.program_id(0) == 0)
        def _zero_tail():
            patch_ref[pl.ds(k_total, k_pad - k_total), :] = jnp.zeros(
                (k_pad - k_total, p_total), patch_ref.dtype)

    # Build the (K, P) patch tile from lane-shifted slices of the flat input.
    # Mask multiply is kept in f32 (v5e has no bf16 VALU); a single bf16 cast
    # happens on the patch store.
    for base, taps in groups:
        for (t, m_idx, shift) in taps:
            v = x_ref[0, :, pl.ds(pad0 + base + shift, p_total)]
            v = v.astype(jnp.float32) * m_ref[m_idx]           # (Cin, P) f32
            patch_ref[pl.ds(t * cin, cin), :] = v.astype(patch_ref.dtype)

    # Conv as a single bf16 MXU matmul with f32 accumulation.
    y = jnp.dot(w_ref[...], patch_ref[...],
                preferred_element_type=jnp.float32)            # (Cout, P) f32

    # InstanceNorm3d(affine): shifted two-pass stats (robust vs E[x^2]-E[x]^2).
    inv_p = 1.0 / p_total
    mean = jnp.sum(y, axis=1, keepdims=True) * inv_p
    d = y - mean
    var = jnp.sum(d * d, axis=1, keepdims=True) * inv_p
    gb = gb_ref[...]
    yn = d * jax.lax.rsqrt(var + eps) * gb[:, 0:1] + gb[:, 1:2]

    # LeakyReLU(0.01)
    act = jnp.where(yn >= 0.0, yn, slope * yn).astype(o_ref.dtype)

    if out_padded:
        # Emit the activation already in the zero-bordered flat layout the next
        # conv layer consumes: no XLA re-pad / channel-slice round trip.
        z = jnp.zeros((cout, pad0), o_ref.dtype)
        o_ref[0, :, pl.ds(0, pad0)] = z
        o_ref[0, :, pl.ds(pad0 + p_total, pad0)] = z
        o_ref[0, :, pl.ds(pad0, p_total)] = act
    else:
        o_ref[0] = act


# ---------------------------------------------------------------------------
# Wrappers
# ---------------------------------------------------------------------------

def _max_pool3d(x, k):
    """Floor-mode max_pool3d with stride == kernel (== F.max_pool3d). Reads the
    raw input once and writes the pooled tensor once (no candidate arrays)."""
    if k == (1, 1, 1):
        return x
    return lax.reduce_window(x, -jnp.inf, lax.max,
                             (1, 1) + k, (1, 1) + k, 'VALID')


def fmu_flatpad(streams, pad0, fmu=None, out_dtype=jnp.bfloat16):
    """FMU-fuse (or pass through) pooled streams and emit the result as
    (N, C, pad0 + P + pad0) bf16 with zeroed borders, ready for the
    implicit-GEMM conv kernels."""
    shp = streams[0].shape
    for s in streams[1:]:
        assert s.shape == shp, \
            'pooled streams must have matching shapes for FMU'
    N, C, Dp, Hp, Wp = shp
    P = Dp * Hp * Wp
    NC = N * C
    p_padded = P + 2 * pad0
    flat = [s.reshape(NC, P) for s in streams]     # contiguous -> free reshape
    n_in = len(flat)
    in_item = flat[0].dtype.itemsize
    out_item = jnp.dtype(out_dtype).itemsize

    # Row-block from a VMEM budget (double-buffered inputs + output).
    per_row = 2 * n_in * P * in_item + 2 * p_padded * out_item
    bc = max(1, min(NC, _FMU_VMEM_BUDGET // per_row))
    if bc >= 8:
        bc = (bc // 8) * 8

    kernel = functools.partial(_fmu_pad_kernel, n_in=n_in, pad0=pad0,
                               p_total=P, fmu=fmu)
    ce = pl.CostEstimate(
        flops=int(2 * NC * P * n_in),
        transcendentals=0,
        bytes_accessed=int(NC * (n_in * P * in_item + p_padded * out_item)))

    out = pl.pallas_call(
        kernel,
        out_shape=jax.ShapeDtypeStruct((NC, p_padded), out_dtype),
        grid=(pl.cdiv(NC, bc),),
        in_specs=[pl.BlockSpec((bc, P), lambda i: (i, 0))] * n_in,
        out_specs=pl.BlockSpec((bc, p_padded), lambda i: (i, 0)),
        compiler_params=pltpu.CompilerParams(
            dimension_semantics=("parallel",),
            vmem_limit_bytes=_VMEM_LIMIT),
        cost_estimate=ce,
    )(*flat)
    return out.reshape(N, C, p_padded), shp


def _conv_geometry(spatial, ksize, padding):
    """Tap groups (flat shift per (depth, height) tap, per-width shift within
    the group) and 0/1 H/W boundary masks shared across depth taps."""
    D, H, W = spatial
    kd, kh, kw = ksize
    pd, ph, pw = padding
    P = D * H * W
    hh = np.arange(H)[:, None]
    ww = np.arange(W)[None, :]
    masks = []
    for b in range(kh):
        for c in range(kw):
            mhw = ((hh + b - ph >= 0) & (hh + b - ph < H) &
                   (ww + c - pw >= 0) & (ww + c - pw < W))
            masks.append(np.broadcast_to(mhw, (D, H, W)).reshape(1, P))
    groups = []
    for a in range(kd):
        for b in range(kh):
            base = (a - pd) * H * W + (b - ph) * W          # reference c == pw
            taps = tuple((int((a * kh + b) * kw + c), int(b * kw + c),
                          int(c - pw)) for c in range(kw))
            groups.append((int(base), taps))
    return tuple(groups), np.stack(masks, axis=0).astype(np.float32)


def conv3d_in_lrelu_flat(x, wf, gb, *, spatial, ksize, padding, pad0, cin,
                         in_ch_block=0, out_padded=False,
                         out_dtype=jnp.float32, eps=1e-5, slope=0.01):
    """Conv3d(stride 1, 'same') + InstanceNorm3d(affine) + LeakyReLU on a flat,
    zero-bordered activation (N, C_total, pad0 + P + pad0).  The input channel
    block is selected with the BlockSpec index_map (no XLA slice)."""
    N, c_total, p_padded = x.shape
    D, H, W = spatial
    P = D * H * W
    assert p_padded == P + 2 * pad0
    assert c_total >= cin * (in_ch_block + 1)
    groups, mask_np = _conv_geometry(spatial, ksize, padding)
    assert max(abs(g[0]) + max(abs(s) for (_, _, s) in g[1])
               for g in groups) <= pad0
    cout, k_pad = wf.shape
    ntaps = ksize[0] * ksize[1] * ksize[2]
    n_hw = ksize[1] * ksize[2]
    k_total = ntaps * cin
    assert k_total <= k_pad
    mask = jnp.asarray(mask_np)                               # (kh*kw, 1, P) f32

    kernel = functools.partial(
        _conv_in_lrelu_kernel, groups=groups, cin=cin, k_total=k_total,
        k_pad=k_pad, p_total=P, pad0=pad0, out_padded=out_padded,
        eps=eps, slope=slope)

    out_lanes = p_padded if out_padded else P
    out_item = jnp.dtype(out_dtype).itemsize
    ce = pl.CostEstimate(
        flops=int(2 * N * cout * k_pad * P),
        transcendentals=int(N * cout),
        bytes_accessed=int(N * cin * p_padded * x.dtype.itemsize
                           + N * cout * out_lanes * out_item
                           + cout * k_pad * wf.dtype.itemsize
                           + n_hw * P * 4 + cout * 2 * 4))

    return pl.pallas_call(
        kernel,
        out_shape=jax.ShapeDtypeStruct((N, cout, out_lanes), out_dtype),
        grid=(N,),
        in_specs=[
            pl.BlockSpec((1, cin, p_padded),
                         lambda n, cb=in_ch_block: (n, cb, 0)),
            pl.BlockSpec((cout, k_pad), lambda n: (0, 0)),
            pl.BlockSpec((n_hw, 1, P), lambda n: (0, 0, 0)),
            pl.BlockSpec((cout, 2), lambda n: (0, 0)),
        ],
        out_specs=pl.BlockSpec((1, cout, out_lanes), lambda n: (n, 0, 0)),
        scratch_shapes=[pltpu.VMEM((k_pad, P), jnp.bfloat16)],
        compiler_params=pltpu.CompilerParams(
            # 'arbitrary' (sequential grid) makes the step-0 scratch zero-init
            # safe.  TODO(synk): per-core init + parallel axis for v7x's 2 TCs.
            dimension_semantics=("arbitrary",),
            vmem_limit_bytes=_VMEM_LIMIT),
        cost_estimate=ce,
    )(x, wf, mask, gb)


def _prep_weight(w):
    """(Cout, Cin, kd, kh, kw) -> (Cout, K_pad) bf16, tap-major, K padded to 128."""
    cout, cin = w.shape[0], w.shape[1]
    ntaps = w.shape[2] * w.shape[3] * w.shape[4]
    wf = w.reshape(cout, cin, ntaps).transpose(0, 2, 1).reshape(cout, ntaps * cin)
    k = ntaps * cin
    k_pad = _ceil_to(k, 128)
    if k_pad > k:
        wf = jnp.pad(wf, ((0, 0), (0, k_pad - k)))
    return wf.astype(jnp.bfloat16)


# ---------------------------------------------------------------------------
# Down module (JAX/Pallas port, forward only)
# ---------------------------------------------------------------------------

class Down:
    def __init__(self, key, in_channels, out_channels, mode, FMU='sub',
                 downsample=True, min_z=8):
        self.mode_in, self.mode_out = mode
        self.FMU = FMU
        self.downsample = downsample
        self.min_z = min_z
        self.in_channels = in_channels
        self.out_channels = out_channels

        keys = list(jax.random.split(key, 4))

        def conv_layer_params(k, cin, cout, ks):
            kw_, kb_ = jax.random.split(k)
            fan_in = cin * ks[0] * ks[1] * ks[2]
            bound = 1.0 / math.sqrt(fan_in)
            return dict(
                # bias kept for parity with nn.Conv3d but NOT used by the
                # kernels: InstanceNorm's mean subtraction cancels it exactly.
                w=jax.random.uniform(kw_, (cout, cin) + ks, jnp.float32, -bound, bound),
                b=jax.random.uniform(kb_, (cout,), jnp.float32, -bound, bound),
                gamma=jnp.ones((cout,), jnp.float32),
                beta=jnp.zeros((cout,), jnp.float32),
            )

        if self.mode_out in ('2d', 'both'):
            self.cb2d = [conv_layer_params(keys[0], in_channels, out_channels, (1, 3, 3)),
                         conv_layer_params(keys[1], out_channels, out_channels, (1, 3, 3))]
        if self.mode_out in ('3d', 'both'):
            self.cb3d = [conv_layer_params(keys[2], in_channels, out_channels, (3, 3, 3)),
                         conv_layer_params(keys[3], out_channels, out_channels, (3, 3, 3))]

        def _gb(lp):
            return jnp.stack([lp['gamma'], lp['beta']], axis=1)   # (Cout, 2)

        # Kernel-ready layer-1 weights.  For mode_out == 'both' the 2d (1,3,3)
        # weights are zero-embedded into the 27-tap layout and concatenated
        # with the 3d weights along C_out: both branches' first layer run as
        # ONE matmul over the shared pooled input.
        if self.mode_out == 'both':
            w2d_emb = jnp.zeros_like(self.cb3d[0]['w'])
            w2d_emb = w2d_emb.at[:, :, 1:2].set(self.cb2d[0]['w'])
            self.w1f = _prep_weight(jnp.concatenate([w2d_emb, self.cb3d[0]['w']], axis=0))
            self.gb1 = jnp.concatenate([_gb(self.cb2d[0]), _gb(self.cb3d[0])], axis=0)
            self.l1_ksize, self.l1_pad = (3, 3, 3), (1, 1, 1)
        elif self.mode_out == '2d':
            self.w1f = _prep_weight(self.cb2d[0]['w'])
            self.gb1 = _gb(self.cb2d[0])
            self.l1_ksize, self.l1_pad = (1, 3, 3), (0, 1, 1)
        else:  # '3d'
            self.w1f = _prep_weight(self.cb3d[0]['w'])
            self.gb1 = _gb(self.cb3d[0])
            self.l1_ksize, self.l1_pad = (3, 3, 3), (1, 1, 1)

        if self.mode_out in ('2d', 'both'):
            self.w2f_2d = _prep_weight(self.cb2d[1]['w'])
            self.gb2_2d = _gb(self.cb2d[1])
        if self.mode_out in ('3d', 'both'):
            self.w2f_3d = _prep_weight(self.cb3d[1]['w'])
            self.gb2_3d = _gb(self.cb3d[1])

    def __call__(self, x):
        cout = self.out_channels

        # ---- downsample: reduce_window max-pool per stream (read-once /
        #      write-once) + Pallas kernel fusing FMU + bf16 cast + flatten +
        #      zero-bordered lane-aligned padding --------------------------------
        if self.downsample:
            if self.mode_in == 'both':
                x2d, x3d = x
                k2 = (1, 2, 2)
                k3 = (2, 2, 2) if x3d.shape[2] >= self.min_z else (1, 2, 2)
                p2d = _max_pool3d(x2d, k2)
                p3d = _max_pool3d(x3d, k3)
                Hp, Wp = p2d.shape[3], p2d.shape[4]
                pad0 = _ceil_to(Hp * Wp + Wp + 1, 128)
                if self.FMU in ('sub', 'sum'):
                    xfp, shp = fmu_flatpad([p2d, p3d], pad0, fmu=self.FMU)
                elif self.FMU == 'cat':
                    xa, shp = fmu_flatpad([p2d], pad0)
                    xb, _ = fmu_flatpad([p3d], pad0)
                    xfp = jnp.concatenate([xa, xb], axis=1)
                else:
                    raise NotImplementedError(self.FMU)
            else:
                k = (1, 2, 2)
                if self.mode_in == '3d' and x.shape[2] >= self.min_z:
                    k = (2, 2, 2)
                p = _max_pool3d(x, k)
                Hp, Wp = p.shape[3], p.shape[4]
                pad0 = _ceil_to(Hp * Wp + Wp + 1, 128)
                xfp, shp = fmu_flatpad([p], pad0)
        else:
            Hp, Wp = x.shape[3], x.shape[4]
            pad0 = _ceil_to(Hp * Wp + Wp + 1, 128)
            xfp, shp = fmu_flatpad([x], pad0)

        N = xfp.shape[0]
        cin_l1 = xfp.shape[1]
        Dp, Hp, Wp = shp[2], shp[3], shp[4]
        spatial = (Dp, Hp, Wp)

        # ---- layer 1 (for 'both': 2d + 3d branches fused into one matmul);
        #      output is emitted directly in the padded flat layout so layer 2
        #      consumes it with no intervening XLA pass ---------------------------
        y1 = conv3d_in_lrelu_flat(
            xfp, self.w1f, self.gb1, spatial=spatial, ksize=self.l1_ksize,
            padding=self.l1_pad, pad0=pad0, cin=cin_l1, in_ch_block=0,
            out_padded=True, out_dtype=jnp.bfloat16)

        # ---- layer 2 (per branch; branch channel half picked by index_map) ----
        if self.mode_out == 'both':
            out2d = conv3d_in_lrelu_flat(
                y1, self.w2f_2d, self.gb2_2d, spatial=spatial,
                ksize=(1, 3, 3), padding=(0, 1, 1), pad0=pad0, cin=cout,
                in_ch_block=0, out_dtype=jnp.float32)
            out3d = conv3d_in_lrelu_flat(
                y1, self.w2f_3d, self.gb2_3d, spatial=spatial,
                ksize=(3, 3, 3), padding=(1, 1, 1), pad0=pad0, cin=cout,
                in_ch_block=1, out_dtype=jnp.float32)
            return (out2d.reshape(N, cout, Dp, Hp, Wp),
                    out3d.reshape(N, cout, Dp, Hp, Wp))
        elif self.mode_out == '2d':
            out = conv3d_in_lrelu_flat(
                y1, self.w2f_2d, self.gb2_2d, spatial=spatial, ksize=(1, 3, 3),
                padding=(0, 1, 1), pad0=pad0, cin=cout, in_ch_block=0,
                out_dtype=jnp.float32)
            return out.reshape(N, cout, Dp, Hp, Wp)
        else:  # '3d'
            out = conv3d_in_lrelu_flat(
                y1, self.w2f_3d, self.gb2_3d, spatial=spatial, ksize=(3, 3, 3),
                padding=(1, 1, 1), pad0=pad0, cin=cout, in_ch_block=0,
                out_dtype=jnp.float32)
            return out.reshape(N, cout, Dp, Hp, Wp)


# ---------------------------------------------------------------------------
# Pure-JAX f32 reference (validation only)
# ---------------------------------------------------------------------------

def _conv3d_ref(x, w, b, padding):
    dn = jax.lax.conv_dimension_numbers(x.shape, w.shape, ('NCDHW', 'OIDHW', 'NCDHW'))
    y = jax.lax.conv_general_dilated(
        x, w, window_strides=(1, 1, 1),
        padding=[(p, p) for p in padding], dimension_numbers=dn)
    return y + b[None, :, None, None, None]


def _in_lrelu_ref(y, g, be):
    mean = y.mean(axis=(2, 3, 4), keepdims=True)
    var = ((y - mean) ** 2).mean(axis=(2, 3, 4), keepdims=True)
    yn = (y - mean) / jnp.sqrt(var + 1e-5)
    yn = yn * g[None, :, None, None, None] + be[None, :, None, None, None]
    return jnp.where(yn >= 0, yn, 0.01 * yn)


if __name__ == "__main__":
    key = jax.random.PRNGKey(0)
    kx1, kx2, kparams = jax.random.split(key, 3)

    N, Cin, D, H, W = 2, 4, 4, 16, 16
    Cout = 8
    x2d = jax.random.normal(kx1, (N, Cin, D, H, W), dtype=jnp.float32)
    x3d = jax.random.normal(kx2, (N, Cin, D, H, W), dtype=jnp.float32)

    model = Down(kparams, Cin, Cout, mode=('both', 'both'), FMU='sub',
                 downsample=True, min_z=8)

    out2d, out3d = model((x2d, x3d))
    jax.block_until_ready((out2d, out3d))

    # --- validate against pure-JAX f32 reference (reference keeps the conv
    #     bias; the kernel drops it because InstanceNorm cancels it exactly) ---
    p2d = _max_pool3d(x2d, (1, 2, 2))
    k3 = (2, 2, 2) if x3d.shape[2] >= model.min_z else (1, 2, 2)
    p3d = _max_pool3d(x3d, k3)
    fused = jnp.abs(p2d - p3d)

    def cb_ref(x, layers, padding):
        for lp in layers:
            x = _in_lrelu_ref(_conv3d_ref(x, lp["w"], lp["b"], padding),
                              lp["gamma"], lp["beta"])
        return x

    ref2d = cb_ref(fused, model.cb2d, (0, 1, 1))
    ref3d = cb_ref(fused, model.cb3d, (1, 1, 1))

    assert out2d.shape == ref2d.shape == (N, Cout, D, H // 2, W // 2)
    assert out3d.shape == ref3d.shape == (N, Cout, D, H // 2, W // 2)
    # bf16 matmul operands / inter-layer activation => slightly looser tolerance
    assert jnp.allclose(out2d, ref2d, atol=3e-2, rtol=3e-2), \
        float(jnp.max(jnp.abs(out2d - ref2d)))
    assert jnp.allclose(out3d, ref3d, atol=3e-2, rtol=3e-2), \
        float(jnp.max(jnp.abs(out3d - ref3d)))

    print("KERNEL_OK")
</pallas_src>

<mosaic_0001>
module attributes {stable_mosaic.version = 11 : i64} {
  func.func @_fmu_pad_kernel(%arg0: i32, %arg1: memref<8x256xf32, #tpu.memory_space<vmem>>, %arg2: memref<8x256xf32, #tpu.memory_space<vmem>>, %arg3: memref<8x512xbf16, #tpu.memory_space<vmem>>) attributes {dimension_semantics = [#tpu.dimension_semantics<parallel>], iteration_bounds = array<i64: 1>, scalar_prefetch = 0 : i64, scratch_operands = 0 : i64, tpu.core_type = #tpu.core_type<tc>, window_params = [{transform_indices = @transform_0, window_bounds = array<i64: 8, 256>}, {transform_indices = @transform_1, window_bounds = array<i64: 8, 256>}, {transform_indices = @transform_2, window_bounds = array<i64: 8, 512>}]} {
    %c0 = arith.constant 0 : index
    %c0_0 = arith.constant 0 : index
    %0 = vector.load %arg1[%c0, %c0_0] : memref<8x256xf32, #tpu.memory_space<vmem>>, vector<8x256xf32>
    %c0_1 = arith.constant 0 : index
    %c0_2 = arith.constant 0 : index
    %1 = vector.load %arg2[%c0_1, %c0_2] : memref<8x256xf32, #tpu.memory_space<vmem>>, vector<8x256xf32>
    %2 = arith.subf %0, %1 : vector<8x256xf32>
    %3 = math.absf %2 : vector<8x256xf32>
    %cst = arith.constant 0.000000e+00 : bf16
    %4 = vector.broadcast %cst : bf16 to vector<8x128xbf16>
    %c0_3 = arith.constant 0 : index
    %c0_4 = arith.constant 0 : index
    %5 = vector.load %arg3[%c0_3, %c0_4] : memref<8x512xbf16, #tpu.memory_space<vmem>>, vector<8x128xbf16>
    tpu.vector_store %arg3[%c0_3, %c0_4], %4 {strides = array<i32>} : memref<8x512xbf16, #tpu.memory_space<vmem>>, vector<8x128xbf16>,
    %c0_5 = arith.constant 0 : index
    %c384 = arith.constant 384 : index
    %6 = vector.load %arg3[%c0_5, %c384] : memref<8x512xbf16, #tpu.memory_space<vmem>>, vector<8x128xbf16>
    tpu.vector_store %arg3[%c0_5, %c384], %4 {strides = array<i32>} : memref<8x512xbf16, #tpu.memory_space<vmem>>, vector<8x128xbf16>,
    %7 = arith.truncf %3 : vector<8x256xf32> to vector<8x256xbf16>
    %c0_6 = arith.constant 0 : index
    %c128 = arith.constant 128 : index
    %8 = vector.load %arg3[%c0_6, %c128] : memref<8x512xbf16, #tpu.memory_space<vmem>>, vector<8x256xbf16>
    tpu.vector_store %arg3[%c0_6, %c128], %7 {strides = array<i32>} : memref<8x512xbf16, #tpu.memory_space<vmem>>, vector<8x256xbf16>,
    return
  }
  func.func @transform_0(%arg0: i32) -> (i32, i32) {
    %c0_i32 = arith.constant 0 : i32
    %c0_i32_0 = arith.constant 0 : i32
    return %arg0, %c0_i32 : i32, i32
  }
  func.func @transform_1(%arg0: i32) -> (i32, i32) {
    %c0_i32 = arith.constant 0 : i32
    %c0_i32_0 = arith.constant 0 : i32
    return %arg0, %c0_i32 : i32, i32
  }
  func.func @transform_2(%arg0: i32) -> (i32, i32) {
    %c0_i32 = arith.constant 0 : i32
    %c0_i32_0 = arith.constant 0 : i32
    return %arg0, %c0_i32 : i32, i32
  }
}

</mosaic_0001>

<bundles_post_ra>
// kernel: tpu_custom_call.1
= control target key start
LH: loop header
LB: loop body
LE: loop exit
PB: predicated region body
PF: predicated region fallthrough
CT: control target
= control target key end

     0   :  { %7 = vsyncpa [#allocation3], 0  ;;  %s181_s0 = inlined_call_operand.hbm [shape: f32[8,256], index: 0, kind: input, shape index: {}]   ;;  %s182_s1 = inlined_call_operand.hbm [shape: f32[8,256], index: 1, kind: input, shape index: {}]   ;;  %s183_s2 = inlined_call_operand.hbm [shape: bf16[8,512], index: 2, kind: output, shape index: {}]  }
   0x1   :  { %8 = vsyncpa [#allocation6], 0 }
   0x2   :  { %9 = vsyncpa [#allocation4], 0  ;;  %s15_s11 = sshll.u32 %s181_s0, 4  ;;  %s153_s12 = smov [#allocation2]   ;;  %s16_s11 = int_to_ptr.hbm [resolvable:$true] %s15_s11 }
   0x3   :  { %s17_s13 = sshll.u32 %s153_s12, 4  ;;  %s26_s16 = sshll.u32 %s182_s1, 4  ;;  %s18_s13 = int_to_ptr.vmem [resolvable:$true] %s17_s13  ;;  %s27_s16 = int_to_ptr.hbm [resolvable:$true] %s26_s16 }
   0x4   :  { %20 = dma.hbm_to_vmem [thread:$0]  %s16_s11, 256, %s18_s13, [#allocation3]  }
   0x5   :  { %s154_s17 = smov [#allocation5]  }
   0x6   :  { %s28_s18 = sshll.u32 %s154_s17, 4  ;;  %s29_s18 = int_to_ptr.vmem [resolvable:$true] %s28_s18 }
   0x7   :  { %31 = dma.hbm_to_vmem [thread:$0]  %s27_s16, 256, %s29_s18, [#allocation6]  }
   0x8   :  { %147 = dma.done.wait [#allocation3], 256  }
   0x9   :  { %148 = vsyncadd [#allocation3], 4294967040 }
   0xa   :  { %149 = dma.done.wait [#allocation6], 256  }
   0xb   :  { %150 = vsyncadd [#allocation6], 4294967040  ;;  %v155_v0 = vmov 0   ;;  %v41_v1 = vld [vmem:[#allocation2] sm:$0xff]  ;;  %v42_v2 = vld [vmem:[#allocation2 + $0x8] sm:$0xff]  ;;  %s156_s0 = smov [#allocation7]  }
   0xc   :  { %49 = vst [vmem:[#allocation7] sm:$0xf] %v155_v0  ;;  %v43_v3 = vld [vmem:[#allocation5] sm:$0xff]  ;;  %v44_v4 = vld [vmem:[#allocation5 + $0x8] sm:$0xff]  ;;  %s58_s1 = sshll.u32 %s156_s0, 4  ;;  %s60_s21 = sshll.u32 %s183_s2, 4  ;;  %s59_s1 = int_to_ptr.vmem [resolvable:$true] %s58_s1  ;;  %s61_s21 = int_to_ptr.hbm [resolvable:$true] %s60_s21 }
   0xd   :  { %50 = vst [vmem:[#allocation7 + $0xc] sm:$0xf] %v155_v0  ;;  %v45_v5 = vsub.f32 %v41_v1, %v43_v3  ;;  %v46_v6 = vsub.f32 %v42_v2, %v44_v4 }
   0xf   :  { %v47_v7 = vand.u32 2147483647, %v45_v5  ;;  %v48_v8 = vand.u32 2147483647, %v46_v6 }
  0x11   :  { %v51_v9 = vpack.c.bf16 %v48_v8, %v47_v7 }
  0x13   :  { %52 = vst [vmem:[#allocation7 + $0x4] sm:$0xff] %v51_v9 }
  0x14   :  { %63 = dma.vmem_to_hbm [thread:$0]  %s59_s1, 256, %s61_s21, [#allocation4]  }
  0x15   :  { %151 = dma.done.wait [#allocation4], 256  }
  0x16   :  { %152 = vsyncadd [#allocation4], 4294967040 }
  0x17   :  { %68 = vsyncpa [#allocation3], 1 }
  0x18   :  { %69 = vsyncpa [#allocation6], 1 }
  0x19   :  { %70 = vsyncpa [#allocation4], 1 }

</bundles_post_ra>
